<compile_context>
chip_gen: v6e
topology: v6e:2x2x1
jax: 0.10.0
libtpu: 0.0.40
codegen_flags: <defaults>
</compile_context>

<pallas_src>
import functools

import jax
import jax.numpy as jnp
import numpy as np
from jax.experimental import pallas as pl
from jax.experimental.pallas import tpu as pltpu

_NEG_INF = float("-inf")
_MIB = 1024 * 1024


# --------------------------------------------------------------------------------------
# VMEM sizing helpers
# --------------------------------------------------------------------------------------
def _vmem_budgets():
    """(vmem_limit_bytes, tile_budget_bytes), generation-aware with a safe fallback."""
    cap = None
    try:
        cap = int(getattr(pltpu.get_tpu_info(), "vmem_capacity_bytes"))
    except Exception:
        cap = None
    if not cap or cap <= 0:
        cap = 64 * _MIB  # conservative floor: v7x per-TensorCore VMEM
    limit = min((cap * 5) // 8, 96 * _MIB)          # ~40 MiB on v7x, ~80 MiB on 128-MiB parts
    budget = max(limit - 12 * _MIB, 8 * _MIB)       # headroom for Mosaic internal scratch
    return int(limit), int(budget)


def _round_up(a, b):
    return -(-a // b) * b


def _sublane_mult(itemsize):
    # 8 rows for f32, 16 for bf16, 32 for int8 (sub-32-bit dtypes pack along sublanes).
    return max(8, 32 // max(int(itemsize), 1))


def _per_row_bytes(V, itemsize, n_io):
    """Bytes of VMEM needed per tile row for the full-V row-tiled kernels."""
    # Double-buffered input/output slabs + live [tile, V] f32 temporaries in the body
    # (z, exp(z), zt/exp(zt), ...), + one extra f32 upcast copy for sub-32-bit inputs.
    n_temps = (6 if n_io == 3 else 4) + (1 if itemsize < 4 else 0)
    return n_io * 2 * V * itemsize + n_temps * V * 4


def _choose_row_tile(M, V, itemsize, n_io, tile_budget):
    """Largest row tile fitting the budget; None if even the minimum tile doesn't fit."""
    mult = _sublane_mult(itemsize)
    per_row = _per_row_bytes(V, itemsize, n_io)
    if mult * per_row > tile_budget:
        return None  # huge vocabulary -> V-chunked fallback
    tile = max(mult, (tile_budget // per_row) // mult * mult)
    # Keep several grid steps when M allows it: >=4 for large M, >=2 for mid-size M
    # (so both v7x TensorCores get work); single step only when M is tiny.
    if M >= 4 * mult:
        tile = min(tile, _round_up(-(-M // 4), mult))
    elif M >= 2 * mult:
        tile = min(tile, _round_up(-(-M // 2), mult))
    else:
        tile = min(tile, _round_up(M, mult))
    return int(tile)


def _choose_chunked_tiles(M, V, itemsize, n_io, tile_budget):
    """(row_tile, v_chunk) for the V-chunked fallback path."""
    mult = _sublane_mult(itemsize)
    row_tile = _round_up(min(M, 8 * mult), mult)
    per_elem = n_io * 2 * itemsize + ((6 if n_io == 3 else 4) + (1 if itemsize < 4 else 0)) * 4
    vc = (tile_budget // max(row_tile * per_elem, 1)) // 128 * 128
    vc = max(128, min(vc, _round_up(V, 128)))
    return int(row_tile), int(vc)


# --------------------------------------------------------------------------------------
# Full-V row-tiled kernels
# --------------------------------------------------------------------------------------
def _logsoftmax1_kernel(x_ref, out_ref):
    """Numerically-stable log-softmax along the last axis, single output."""
    x = x_ref[...].astype(jnp.float32)
    m = jnp.max(x, axis=-1, keepdims=True)
    z = x - m
    lse = jnp.log(jnp.sum(jnp.exp(z), axis=-1, keepdims=True))
    out_ref[...] = (z - lse).astype(out_ref.dtype)


def _logsoftmax2_kernel(x_ref, out_ref, out_t_ref, *, inv_t):
    """log_softmax(x) and log_softmax(x * inv_t) in one pass over the tile."""
    # Plain branch first and stored, so exp(z) is dead before the temperature
    # temporaries are created (keeps only ~3 [tile, V] f32 temps live at peak).
    x = x_ref[...].astype(jnp.float32)
    m = jnp.max(x, axis=-1, keepdims=True)
    z = x - m
    lse = jnp.log(jnp.sum(jnp.exp(z), axis=-1, keepdims=True))
    out_ref[...] = (z - lse).astype(out_ref.dtype)

    # Temperature branch: inv_t = 1/T > 0, so max(x*inv_t) = inv_t*m -> reuse z.
    zt = z * jnp.float32(inv_t)
    lset = jnp.log(jnp.sum(jnp.exp(zt), axis=-1, keepdims=True))
    out_t_ref[...] = (zt - lset).astype(out_t_ref.dtype)


# --------------------------------------------------------------------------------------
# V-chunked fallback kernels (online LSE, then apply)
# --------------------------------------------------------------------------------------
def _lse1_chunk_kernel(x_ref, lse_ref, m_sc, s_sc, *, v_total, v_chunk):
    k = pl.program_id(1)

    @pl.when(k == 0)
    def _():
        m_sc[...] = jnp.full_like(m_sc, _NEG_INF)
        s_sc[...] = jnp.zeros_like(s_sc)

    x = x_ref[...].astype(jnp.float32)
    col = k * v_chunk + jax.lax.broadcasted_iota(jnp.int32, x.shape, dimension=1)
    x = jnp.where(col < v_total, x, _NEG_INF)   # mask padded V columns out of the LSE

    m_old = m_sc[...]
    m_new = jnp.maximum(m_old, jnp.max(x, axis=-1, keepdims=True))
    s_sc[...] = s_sc[...] * jnp.exp(m_old - m_new) + jnp.sum(
        jnp.exp(x - m_new), axis=-1, keepdims=True)
    m_sc[...] = m_new

    @pl.when(k == pl.num_programs(1) - 1)
    def _():
        lse_ref[...] = m_sc[...] + jnp.log(s_sc[...])


def _lse2_chunk_kernel(x_ref, lse_ref, lset_ref, m_sc, s_sc, st_sc, *, inv_t, v_total, v_chunk):
    k = pl.program_id(1)

    @pl.when(k == 0)
    def _():
        m_sc[...] = jnp.full_like(m_sc, _NEG_INF)
        s_sc[...] = jnp.zeros_like(s_sc)
        st_sc[...] = jnp.zeros_like(st_sc)

    x = x_ref[...].astype(jnp.float32)
    col = k * v_chunk + jax.lax.broadcasted_iota(jnp.int32, x.shape, dimension=1)
    x = jnp.where(col < v_total, x, _NEG_INF)

    it = jnp.float32(inv_t)
    m_old = m_sc[...]
    m_new = jnp.maximum(m_old, jnp.max(x, axis=-1, keepdims=True))
    z = x - m_new
    s_sc[...] = s_sc[...] * jnp.exp(m_old - m_new) + jnp.sum(jnp.exp(z), axis=-1, keepdims=True)
    # Temperature branch shares the running max: max(x*inv_t) = inv_t*max(x) for inv_t > 0.
    st_sc[...] = st_sc[...] * jnp.exp(it * (m_old - m_new)) + jnp.sum(
        jnp.exp(it * z), axis=-1, keepdims=True)
    m_sc[...] = m_new

    @pl.when(k == pl.num_programs(1) - 1)
    def _():
        lse_ref[...] = m_sc[...] + jnp.log(s_sc[...])
        lset_ref[...] = it * m_sc[...] + jnp.log(st_sc[...])


def _apply1_kernel(x_ref, lse_ref, out_ref):
    x = x_ref[...].astype(jnp.float32)
    out_ref[...] = (x - lse_ref[...]).astype(out_ref.dtype)


def _apply2_kernel(x_ref, lse_ref, lset_ref, out_ref, out_t_ref, *, inv_t):
    x = x_ref[...].astype(jnp.float32)
    out_ref[...] = (x - lse_ref[...]).astype(out_ref.dtype)
    out_t_ref[...] = (x * jnp.float32(inv_t) - lset_ref[...]).astype(out_t_ref.dtype)


# --------------------------------------------------------------------------------------
# pallas_call wrappers for each path
# --------------------------------------------------------------------------------------
def _rowtiled_call(x2d, M, V, dtype, row_tile, need_t, inv_t, vmem_limit):
    grid = (pl.cdiv(M, row_tile),)
    io_spec = pl.BlockSpec((row_tile, V), lambda i: (i, 0))
    itemsize = int(jnp.dtype(dtype).itemsize)
    n_io = 3 if need_t else 2
    cost = pl.CostEstimate(
        flops=int((8 if need_t else 5) * M * V),
        transcendentals=int((2 * M * V + 2 * M) if need_t else (M * V + M)),
        bytes_accessed=int(n_io * M * V * itemsize),
    )
    cp = pltpu.CompilerParams(dimension_semantics=("parallel",), vmem_limit_bytes=vmem_limit)

    if need_t:
        return pl.pallas_call(
            functools.partial(_logsoftmax2_kernel, inv_t=inv_t),
            out_shape=(jax.ShapeDtypeStruct((M, V), dtype),
                       jax.ShapeDtypeStruct((M, V), dtype)),
            grid_spec=pltpu.PrefetchScalarGridSpec(
                num_scalar_prefetch=0, grid=grid,
                in_specs=[io_spec], out_specs=[io_spec, io_spec]),
            compiler_params=cp, cost_estimate=cost,
        )(x2d)

    return pl.pallas_call(
        _logsoftmax1_kernel,
        out_shape=jax.ShapeDtypeStruct((M, V), dtype),
        grid_spec=pltpu.PrefetchScalarGridSpec(
            num_scalar_prefetch=0, grid=grid,
            in_specs=[io_spec], out_specs=io_spec),
        compiler_params=cp, cost_estimate=cost,
    )(x2d)


def _chunked_call(x2d, M, V, dtype, row_tile, v_chunk, need_t, inv_t, vmem_limit):
    grid = (pl.cdiv(M, row_tile), pl.cdiv(V, v_chunk))
    x_spec = pl.BlockSpec((row_tile, v_chunk), lambda i, k: (i, k))
    red_spec = pl.BlockSpec((row_tile, 1), lambda i, k: (i, 0))
    scratch = pltpu.VMEM((row_tile, 1), jnp.float32)
    itemsize = int(jnp.dtype(dtype).itemsize)
    n_io = 3 if need_t else 2

    # Pass 1: per-row LSE via online max/sum over V chunks (reduction axis last, arbitrary).
    cp1 = pltpu.CompilerParams(dimension_semantics=("parallel", "arbitrary"),
                               vmem_limit_bytes=vmem_limit)
    cost1 = pl.CostEstimate(
        flops=int((6 if need_t else 3) * M * V),
        transcendentals=int((2 if need_t else 1) * M * V),
        bytes_accessed=int(M * V * itemsize),
    )
    if need_t:
        lse, lset = pl.pallas_call(
            functools.partial(_lse2_chunk_kernel, inv_t=inv_t, v_total=V, v_chunk=v_chunk),
            out_shape=(jax.ShapeDtypeStruct((M, 1), jnp.float32),
                       jax.ShapeDtypeStruct((M, 1), jnp.float32)),
            grid_spec=pltpu.PrefetchScalarGridSpec(
                num_scalar_prefetch=0, grid=grid,
                in_specs=[x_spec], out_specs=[red_spec, red_spec],
                scratch_shapes=[scratch, scratch, scratch]),
            compiler_params=cp1, cost_estimate=cost1,
        )(x2d)
    else:
        lse = pl.pallas_call(
            functools.partial(_lse1_chunk_kernel, v_total=V, v_chunk=v_chunk),
            out_shape=jax.ShapeDtypeStruct((M, 1), jnp.float32),
            grid_spec=pltpu.PrefetchScalarGridSpec(
                num_scalar_prefetch=0, grid=grid,
                in_specs=[x_spec], out_specs=red_spec,
                scratch_shapes=[scratch, scratch]),
            compiler_params=cp1, cost_estimate=cost1,
        )(x2d)

    # Pass 2: re-read x and emit x - lse (and inv_t*x - lse_t).
    cp2 = pltpu.CompilerParams(dimension_semantics=("parallel", "parallel"),
                               vmem_limit_bytes=vmem_limit)
    cost2 = pl.CostEstimate(
        flops=int((3 if need_t else 1) * M * V),
        transcendentals=0,
        bytes_accessed=int(n_io * M * V * itemsize),
    )
    if need_t:
        return pl.pallas_call(
            functools.partial(_apply2_kernel, inv_t=inv_t),
            out_shape=(jax.ShapeDtypeStruct((M, V), dtype),
                       jax.ShapeDtypeStruct((M, V), dtype)),
            grid_spec=pltpu.PrefetchScalarGridSpec(
                num_scalar_prefetch=0, grid=grid,
                in_specs=[x_spec, red_spec, red_spec],
                out_specs=[x_spec, x_spec]),
            compiler_params=cp2, cost_estimate=cost2,
        )(x2d, lse, lset)

    return pl.pallas_call(
        _apply1_kernel,
        out_shape=jax.ShapeDtypeStruct((M, V), dtype),
        grid_spec=pltpu.PrefetchScalarGridSpec(
            num_scalar_prefetch=0, grid=grid,
            in_specs=[x_spec, red_spec], out_specs=x_spec),
        compiler_params=cp2, cost_estimate=cost2,
    )(x2d, lse)


# --------------------------------------------------------------------------------------
# Public wrapper (= TLogSoftMax.forward)
# --------------------------------------------------------------------------------------
def tlogsoftmax(x, T=2.0, training=True, row_tile=None, v_chunk=None):
    """Pallas implementation of TLogSoftMax.forward (softmax along dim=-1)."""
    if float(T) <= 0.0:
        # Row-max reuse for the temperature branch needs 1/T > 0.
        raise ValueError("TLogSoftMax requires T > 0.")
    inv_t = 1.0 / float(T)
    need_t = bool(training) and inv_t != 1.0

    orig_shape = x.shape
    V = int(orig_shape[-1])
    M = int(np.prod(orig_shape[:-1])) if len(orig_shape) > 1 else 1
    x2d = x.reshape(M, V)
    itemsize = int(jnp.dtype(x.dtype).itemsize)
    n_io = 3 if need_t else 2

    vmem_limit, tile_budget = _vmem_budgets()

    use_chunked = v_chunk is not None
    if not use_chunked and row_tile is None:
        row_tile = _choose_row_tile(M, V, itemsize, n_io, tile_budget)
        if row_tile is None:  # vocabulary too large for a full-V row tile
            use_chunked = True

    if use_chunked:
        if v_chunk is None or row_tile is None:
            auto_rt, auto_vc = _choose_chunked_tiles(M, V, itemsize, n_io, tile_budget)
            row_tile = row_tile if row_tile is not None else auto_rt
            v_chunk = v_chunk if v_chunk is not None else auto_vc
        res = _chunked_call(x2d, M, V, x.dtype, int(row_tile), int(v_chunk),
                            need_t, inv_t, vmem_limit)
    else:
        res = _rowtiled_call(x2d, M, V, x.dtype, int(row_tile),
                             need_t, inv_t, vmem_limit)

    if need_t:
        out, out_t = res
        return out.reshape(orig_shape), out_t.reshape(orig_shape)

    out = res.reshape(orig_shape)
    if training:  # T == 1: the module returns the same tensor twice.
        return out, out
    return out


# --------------------------------------------------------------------------------------
# Self-test
# --------------------------------------------------------------------------------------
if __name__ == "__main__":
    key = jax.random.PRNGKey(0)

    # Small shapes consistent with the module: (batch, seq, classes), softmax on dim=-1.
    B, S, V = 2, 8, 128
    x = jax.random.normal(key, (B, S, V), dtype=jnp.float32)
    T = 2.0
    ref = jax.nn.log_softmax(x, axis=-1)
    ref_t = jax.nn.log_softmax(x * (1.0 / T), axis=-1)

    # Training path, T != 1 -> two outputs.
    out, out_t = tlogsoftmax(x, T=T, training=True)
    jax.block_until_ready((out, out_t))
    assert np.allclose(np.asarray(out), np.asarray(ref), atol=1e-5, rtol=1e-5)
    assert np.allclose(np.asarray(out_t), np.asarray(ref_t), atol=1e-5, rtol=1e-5)

    # Eval path -> single output, single-output kernel.
    out_eval = tlogsoftmax(x, T=T, training=False)
    jax.block_until_ready(out_eval)
    assert np.allclose(np.asarray(out_eval), np.asarray(ref), atol=1e-5, rtol=1e-5)

    # Training path, T == 1 -> (out, out) with the single-output kernel.
    out_a, out_b = tlogsoftmax(x, T=1.0, training=True)
    jax.block_until_ready((out_a, out_b))
    assert np.allclose(np.asarray(out_a), np.asarray(ref), atol=1e-5, rtol=1e-5)
    assert np.allclose(np.asarray(out_b), np.asarray(ref), atol=1e-5, rtol=1e-5)

    # Non-divisible row count exercises the cdiv grid / partial last row block.
    x2 = jax.random.normal(jax.random.PRNGKey(1), (3, 70, 512), dtype=jnp.float32)
    o2, o2t = tlogsoftmax(x2, T=4.0, training=True)
    jax.block_until_ready((o2, o2t))
    assert np.allclose(np.asarray(o2),
                       np.asarray(jax.nn.log_softmax(x2, axis=-1)), atol=1e-5, rtol=1e-5)
    assert np.allclose(np.asarray(o2t),
                       np.asarray(jax.nn.log_softmax(x2 * 0.25, axis=-1)), atol=1e-5, rtol=1e-5)

    # Force the V-chunked fallback (large-vocabulary path) on a small shape.
    x3 = jax.random.normal(jax.random.PRNGKey(2), (4, 16, 384), dtype=jnp.float32)
    o3, o3t = tlogsoftmax(x3, T=3.0, training=True, row_tile=8, v_chunk=128)
    jax.block_until_ready((o3, o3t))
    assert np.allclose(np.asarray(o3),
                       np.asarray(jax.nn.log_softmax(x3, axis=-1)), atol=1e-5, rtol=1e-5)
    assert np.allclose(np.asarray(o3t),
                       np.asarray(jax.nn.log_softmax(x3 * (1.0 / 3.0), axis=-1)),
                       atol=1e-5, rtol=1e-5)

    # Chunked single-output (eval) path.
    o3e = tlogsoftmax(x3, T=3.0, training=False, row_tile=8, v_chunk=128)
    jax.block_until_ready(o3e)
    assert np.allclose(np.asarray(o3e),
                       np.asarray(jax.nn.log_softmax(x3, axis=-1)), atol=1e-5, rtol=1e-5)

    print("KERNEL_OK")
</pallas_src>

<mosaic_0001>
module attributes {stable_mosaic.version = 11 : i64} {
  func.func @_logsoftmax2_kernel(%arg0: i32, %arg1: memref<8x128xf32, #tpu.memory_space<vmem>>, %arg2: memref<8x128xf32, #tpu.memory_space<vmem>>, %arg3: memref<8x128xf32, #tpu.memory_space<vmem>>) attributes {dimension_semantics = [#tpu.dimension_semantics<parallel>], iteration_bounds = array<i64: 2>, scalar_prefetch = 0 : i64, scratch_operands = 0 : i64, tpu.core_type = #tpu.core_type<tc>, window_params = [{transform_indices = @transform_0, window_bounds = array<i64: 8, 128>}, {transform_indices = @transform_1, window_bounds = array<i64: 8, 128>}, {transform_indices = @transform_2, window_bounds = array<i64: 8, 128>}]} {
    %c0 = arith.constant 0 : index
    %c0_0 = arith.constant 0 : index
    %0 = vector.load %arg1[%c0, %c0_0] : memref<8x128xf32, #tpu.memory_space<vmem>>, vector<8x128xf32>
    %cst = arith.constant dense<0xFF800000> : vector<8xf32>
    %1 = vector.multi_reduction <maximumf>, %0, %cst [1] : vector<8x128xf32> to vector<8xf32>
    %2 = vector.shape_cast %1 : vector<8xf32> to vector<8x1xf32>
    %3 = vector.broadcast %2 : vector<8x1xf32> to vector<8x128xf32>
    %4 = arith.subf %0, %3 : vector<8x128xf32>
    %5 = math.exp %4 : vector<8x128xf32>
    %cst_1 = arith.constant dense<0.000000e+00> : vector<8xf32>
    %6 = vector.multi_reduction <add>, %5, %cst_1 [1] : vector<8x128xf32> to vector<8xf32>
    %7 = vector.shape_cast %6 : vector<8xf32> to vector<8x1xf32>
    %8 = math.log %7 : vector<8x1xf32>
    %9 = vector.broadcast %8 : vector<8x1xf32> to vector<8x128xf32>
    %10 = arith.subf %4, %9 : vector<8x128xf32>
    %c0_2 = arith.constant 0 : index
    %c0_3 = arith.constant 0 : index
    %11 = vector.load %arg2[%c0_2, %c0_3] : memref<8x128xf32, #tpu.memory_space<vmem>>, vector<8x128xf32>
    tpu.vector_store %arg2[%c0_2, %c0_3], %10 {strides = array<i32>} : memref<8x128xf32, #tpu.memory_space<vmem>>, vector<8x128xf32>,
    %cst_4 = arith.constant 5.000000e-01 : f32
    %12 = vector.broadcast %cst_4 : f32 to vector<8x128xf32>
    %13 = arith.mulf %4, %12 : vector<8x128xf32>
    %14 = math.exp %13 : vector<8x128xf32>
    %cst_5 = arith.constant dense<0.000000e+00> : vector<8xf32>
    %15 = vector.multi_reduction <add>, %14, %cst_5 [1] : vector<8x128xf32> to vector<8xf32>
    %16 = vector.shape_cast %15 : vector<8xf32> to vector<8x1xf32>
    %17 = math.log %16 : vector<8x1xf32>
    %18 = vector.broadcast %17 : vector<8x1xf32> to vector<8x128xf32>
    %19 = arith.subf %13, %18 : vector<8x128xf32>
    %c0_6 = arith.constant 0 : index
    %c0_7 = arith.constant 0 : index
    %20 = vector.load %arg3[%c0_6, %c0_7] : memref<8x128xf32, #tpu.memory_space<vmem>>, vector<8x128xf32>
    tpu.vector_store %arg3[%c0_6, %c0_7], %19 {strides = array<i32>} : memref<8x128xf32, #tpu.memory_space<vmem>>, vector<8x128xf32>,
    return
  }
  func.func @transform_0(%arg0: i32) -> (i32, i32) {
    %c0_i32 = arith.constant 0 : i32
    %c0_i32_0 = arith.constant 0 : i32
    return %arg0, %c0_i32 : i32, i32
  }
  func.func @transform_1(%arg0: i32) -> (i32, i32) {
    %c0_i32 = arith.constant 0 : i32
    %c0_i32_0 = arith.constant 0 : i32
    return %arg0, %c0_i32 : i32, i32
  }
  func.func @transform_2(%arg0: i32) -> (i32, i32) {
    %c0_i32 = arith.constant 0 : i32
    %c0_i32_0 = arith.constant 0 : i32
    return %arg0, %c0_i32 : i32, i32
  }
}

</mosaic_0001>

<bundles_post_ra>
// kernel: tpu_custom_call.1
= control target key start
LH: loop header
LB: loop body
LE: loop exit
PB: predicated region body
PF: predicated region fallthrough
CT: control target
= control target key end

     0   :  { %8 = vsyncpa [#allocation3], 0  ;;  %s731_s0 = inlined_call_operand.hbm [shape: f32[16,128], index: 0, kind: input, shape index: {}]   ;;  %s732_s1 = inlined_call_operand.hbm [shape: f32[16,128], index: 1, kind: output, shape index: {0}]   ;;  %s733_s2 = inlined_call_operand.hbm [shape: f32[16,128], index: 2, kind: output, shape index: {1}]  }
   0x1   :  { %10 = vsyncpa [#allocation3 + $0x1], 0 }
   0x2   :  { %11 = vsyncpa [#allocation4], 0 }
   0x3   :  { %13 = vsyncpa [#allocation4 + $0x1], 0 }
   0x4   :  { %14 = vsyncpa [#allocation7], 0 }
   0x5   :  { %16 = vsyncpa [#allocation7 + $0x1], 0  ;;  %s541_s9 = smov 0   ;;  %s543_s10 = smov 0  }
   0x6   :  { %s545_s11 = smov 0   ;;  %s547_s12 = smov 0  }
   0x7 LB: > { %s562_s13 = sadd.s32 4294967295, %s521_s12   ;;  %s325_s14 = sadd.s32 4294967294, %s521_s12   ;;  %s521_s12 = sphi %s547_s12, %s750_s12   ;;  %s517_s11 = sphi %s545_s11, %s749_s11   ;;  %s513_s10 = sphi %s543_s10, %s748_s10   ;;  %s509_s9 = sphi %s541_s9, %s747_s9  }
   0x8   : > { %s566_s15 = sadd.s32 1, %s521_s12   ;;  %s29_s16 = sadd.s32 1, %s517_s11 }
   0x9   : > { %s26_s17 = ssub.s32 %s521_s12, %s566_s15  ;;  %p36_p0 = scmp.ne.s32.totalorder %s517_s11, %s513_s10 }
   0xa   : > { %p27_p1 = scmp.eq.s32.totalorder %s26_s17, 0  ;;  %p37_p2 = scmp.eq.s32.totalorder %s521_s12, 0 }
   0xb   : > { %p42_p3 = scmp.ne.s32.totalorder %s513_s10, %s509_s9  ;;  %p43_p4 = scmp.eq.s32.totalorder %s562_s13, 0 }
   0xc   : > { %s578_s18 = scalar_select %p27_p1, %s517_s11, %s29_s16  }
   0xd   : > { %p580_p5 = por %p37_p2, %p36_p0  ;;  %p584_p6 = por %p43_p4, %p42_p3 }
   0xe   : > { %p66_p7 = scmp.eq.s32.totalorder %s562_s13, 1  ;;  %p72_p8 = scmp.eq.s32.totalorder %s325_s14, 1 }
   0xf   : > { %s737_s20 = scalar_select %p584_p6, 1, 0 }
  0x10   : > { %p357_p10 = scmp.lt.s32.totalorder %s521_s12, 2  ;;  %p591_p11 = por %p66_p7, %p36_p0 }
  0x11   : > { %p595_p12 = por %p72_p8, %p42_p3  ;;  %s118_s23 = sand.u32 1, %s517_s11  }
  0x12   : > { %s738_s21 = scalar_select %p591_p11, 1, 0 }
  0x13   : > { %s739_s22 = scalar_select %p595_p12, 1, 0 }
  0x14   : > { %s329_s24 = sshll.u32 %s521_s12, 7  ;;  %s328_s25 = sshll.u32 %s118_s23, 3 }
  0x15   : > { %s604_s28 = scalar_lea.hbm %s731_s0, %s329_s24  ;;  %s122_s29 = scalar_lea.vmem [#allocation2], %s328_s25 }
  0x16   : > { %s129_s30 = sshll.u32 %s122_s29, 4  ;;  %p608_p13 = pnand %p357_p10, %p580_p5  ;;  %s612_s30 = int_to_ptr.vmem [resolvable:$true] %s129_s30 }
  0x17   : > { %s119_s4 = scalar_lea.sflag [#allocation3], %s118_s23  ;;  %s399_s5 = scalar_lea.hbm %s604_s28, 128 }
  0x18   : > { %p400_p2 = scmp.ne.s32.totalorder %s604_s28, %s399_s5  ;;  %p401_p3 = pneg %p608_p13 }
  0x19   : > { %s404_s8 = scalar_lea.hbm %s731_s0, 256  ;;  %p405_p5 = scmp.lt.s32.totalorder %s604_s28, %s731_s0 }
  0x1a   : > { %p402_p4 = pnand %p401_p3, %p400_p2  ;;  %p406_p8 = scmp.lt.s32.totalorder %s404_s8, %s399_s5 }
  0x1c   : > { %p403_p7 = pneg %p402_p4  ;;  %p407_p10 = por %p406_p8, %p405_p5 }
  0x1e   : > { %p408_p9 = pnand %p407_p10, %p403_p7 }
  0x20   : > { %411 = shalt.err (!%p408_p9)
}
  0x21   : > { %s412_s17 = scalar_lea.vmem %s612_s30, 128  ;;  %s523_s19 = smov [#allocation2]  }
  0x22   : > { %p413_p0 = scmp.ne.s32.totalorder %s612_s30, %s412_s17  ;;  %s417_s23 = sshll.u32 %s523_s19, 4  ;;  %s418_s23 = int_to_ptr.vmem [resolvable:$false] %s417_s23 }
  0x23   : > { %s419_s24 = scalar_lea.vmem %s418_s23, 256  ;;  %p420_p4 = scmp.lt.s32.totalorder %s612_s30, %s418_s23 }
  0x24   : > { %p415_p1 = pnand %p413_p0, %p401_p3  ;;  %p421_p12 = scmp.lt.s32.totalorder %s419_s24, %s412_s17 }
  0x26   : > { %p416_p2 = pneg %p415_p1  ;;  %p422_p11 = por %p421_p12, %p420_p4 }
  0x28   : > { %p423_p6 = pnand %p422_p11, %p416_p2 }
  0x2a   : > { %426 = shalt.err (!%p423_p6)
}
  0x2b   : > { %349 = dma.hbm_to_vmem [thread:$0]  (!%p608_p13), %s604_s28, 128, %s612_s30, %s119_s4  }
  0x2c   : > { %p741_p9 = scmp.lt.s32.totalorder %s521_s12, 3  ;;  %p742_p7 = scmp.ge.s32.totalorder %s521_s12, 1 }
  0x2e   : > { %p135_p0 = pnand %p742_p7, %p741_p9 }
  0x2f   : > { %s639_s25 = sand.u32 (!%p135_p0), 1, %s513_s10   ;;  %p743_p6 = scmp.ne.s32.totalorder (!%p135_p0), %s737_s20, 0 }
  0x30   : > { %138 = sbr.rel (%p135_p0) target bundleno = 402 (0x192), region = 24  ;;  %s642_s26 = sshll.u32 (!%p135_p0), %s639_s25, 3 }
  0x31   : > { %s141_s27 = scalar_lea.sflag (!%p135_p0), [#allocation3], %s639_s25  ;;  %s144_s29 = scalar_lea.vmem (!%p135_p0), [#allocation2], %s642_s26 }
  0x35   : > { %496 = dma.done.wait (%p743_p6), %s141_s27, 128  }
  0x36   : > { %498 = vsyncadd (%p743_p6), %s141_s27, 4294967168  ;;  %v170_v0 = vld [vmem:[%s144_s29] sm:$0xff]  ;;  %s336_s20 = sshll.u32 %s562_s13, 7  ;;  %s162_s28 = scalar_lea.vmem [#allocation5], %s642_s26 }
  0x37   : > { %171 = vmax.xlane.f32.xlu0 %v170_v0  ;;  %s210_s30 = sshll.u32 %s162_s28, 4  ;;  %s169_s3 = scalar_lea.vmem [#allocation6], %s642_s26  ;;  %s660_s30 = int_to_ptr.vmem [resolvable:$true] %s210_s30 }
  0x38   : > { %s223_s4 = sshll.u32 %s169_s3, 4  ;;  %s658_s7 = scalar_lea.hbm %s732_s1, %s336_s20  ;;  %s667_s4 = int_to_ptr.vmem [resolvable:$true] %s223_s4 }
  0x39   : > { %s665_s14 = scalar_lea.hbm %s733_s2, %s336_s20  ;;  %s192_s16 = scalar_lea.sflag [#allocation4], %s639_s25 }
  0x3a   : > { %s427_s17 = scalar_lea.vmem %s660_s30, 128  ;;  %p744_p12 = scmp.ne.s32.totalorder %s738_s21, 0 }
  0x3b   : > { %p428_p11 = scmp.ne.s32.totalorder %s660_s30, %s427_s17  ;;  %s524_s19 = smov [#allocation5]  }
  0x3c   : > { %s431_s23 = sshll.u32 %s524_s19, 4  ;;  %s432_s23 = int_to_ptr.vmem [resolvable:$false] %s431_s23 }
  0x3d   : > { %p429_p13 = pnand %p428_p11, %p744_p12  ;;  %s433_s24 = scalar_lea.vmem %s432_s23, 256 }
  0x3e   : > { %p434_p3 = scmp.lt.s32.totalorder %s660_s30, %s432_s23  ;;  %p435_p5 = scmp.lt.s32.totalorder %s433_s24, %s427_s17 }
  0x3f   : > { %p430_p1 = pneg %p429_p13 }
  0x40   : > { %p436_p8 = por %p435_p5, %p434_p3 }
  0x42   : > { %p437_p10 = pnand %p436_p8, %p430_p1 }
  0xc0   : > { %v172_v1 = vpop.xlane.xlu0 %171 }
  0xc1   : > { %v173_v2 = vsub.f32 %v170_v0, %v172_v1 }
  0xc3   : > { %v174_v3 = vmul.f32 1.442695, %v173_v2  ;;  %v182_v4 = vmul.f32 0.5, %v173_v2 }
  0xc5   : > { %391 = vpow2.f32 %v174_v3  ;;  %v183_v5 = vmul.f32 1.442695, %v182_v4 }
  0xc7   : > { %393 = vpow2.f32 %v183_v5 }
  0xd2   : > { %v392_v6 = vpop.eup %391 }
  0xd3   : > { %176 = vadd.xlane.f32.xlu0 %v392_v6 }
  0xd4   : > { %v394_v7 = vpop.eup %393 }
  0xd5   : > { %185 = vadd.xlane.f32.xlu1 %v394_v7 }
 0x15c   : > { %v177_v8 = vpop.xlane.xlu0 %176 }
 0x15d   : > { %395 = vlog2.f32 %v177_v8 }
 0x15e   : > { %v186_v9 = vpop.xlane.xlu1 %185 }
 0x15f   : > { %397 = vlog2.f32 %v186_v9 }
 0x16a   : > { %v396_v10 = vpop.eup %395 }
 0x16b   : > { %v179_v11 = vmul.f32 0.6931472, %v396_v10 }
 0x16c   : > { %v398_v12 = vpop.eup %397 }
 0x16d   : > { %v180_v13 = vsub.f32 %v173_v2, %v179_v11  ;;  %v188_v14 = vmul.f32 0.6931472, %v398_v12 }
 0x16f   : > { %v189_v15 = vsub.f32 %v182_v4, %v188_v14  ;;  %181 = vst [vmem:[%s162_s28] sm:$0xff] %v180_v13 }
 0x170   : > { %440 = shalt.err (!%p437_p10)
}
 0x171   : > { %s441_s27 = scalar_lea.hbm %s658_s7, 128  ;;  %s445_s28 = scalar_lea.hbm %s732_s1, 256 }
 0x172   : > { %p442_p2 = scmp.ne.s32.totalorder %s658_s7, %s441_s27  ;;  %p446_p7 = scmp.lt.s32.totalorder %s658_s7, %s732_s1 }
 0x173   : > { %p447_p0 = scmp.lt.s32.totalorder %s445_s28, %s441_s27 }
 0x174   : > { %p443_p4 = pnand %p442_p2, %p744_p12 }
 0x175   : > { %p448_p6 = por %p447_p0, %p446_p7 }
 0x176   : > { %p444_p9 = pneg %p443_p4 }
 0x178   : > { %p449_p11 = pnand %p448_p6, %p444_p9 }
 0x17a   : > { %452 = shalt.err (!%p449_p11)
}
 0x17b   : > { %342 = dma.vmem_to_hbm [thread:$0]  (%p744_p12), %s660_s30, 128, %s658_s7, %s192_s16   ;;  %190 = vst [vmem:[%s169_s3] sm:$0xff] %v189_v15 }
 0x17c   : > { %s197_s13 = scalar_lea.sflag [#allocation7], %s639_s25  ;;  %s453_s8 = scalar_lea.vmem %s667_s4, 128 }
 0x17d   : > { %p454_p13 = scmp.ne.s32.totalorder %s667_s4, %s453_s8  ;;  %s525_s17 = smov [#allocation6]  }
 0x17e   : > { %s457_s19 = sshll.u32 %s525_s17, 4  ;;  %s458_s19 = int_to_ptr.vmem [resolvable:$false] %s457_s19 }
 0x17f   : > { %p455_p1 = pnand %p454_p13, %p744_p12  ;;  %s459_s23 = scalar_lea.vmem %s458_s19, 256 }
 0x180   : > { %p460_p5 = scmp.lt.s32.totalorder %s667_s4, %s458_s19  ;;  %p461_p8 = scmp.lt.s32.totalorder %s459_s23, %s453_s8 }
 0x181   : > { %p456_p3 = pneg %p455_p1 }
 0x182   : > { %p462_p10 = por %p461_p8, %p460_p5 }
 0x184   : > { %p463_p2 = pnand %p462_p10, %p456_p3 }
 0x186   : > { %466 = shalt.err (!%p463_p2)
}
 0x187   : > { %s467_s26 = scalar_lea.hbm %s665_s14, 128  ;;  %s471_s3 = scalar_lea.hbm %s733_s2, 256 }
 0x188   : > { %p468_p4 = scmp.ne.s32.totalorder %s665_s14, %s467_s26  ;;  %p472_p0 = scmp.lt.s32.totalorder %s665_s14, %s733_s2 }
 0x189   : > { %p473_p6 = scmp.lt.s32.totalorder %s471_s3, %s467_s26 }
 0x18a   : > { %p469_p9 = pnand %p468_p4, %p744_p12 }
 0x18b   : > { %p474_p11 = por %p473_p6, %p472_p0 }
 0x18c   : > { %p470_p7 = pneg %p469_p9 }
 0x18e   : > { %p475_p13 = pnand %p474_p11, %p470_p7 }
 0x190   : > { %478 = shalt.err (!%p475_p13)
}
 0x191   : > { %343 = dma.vmem_to_hbm [thread:$0]  (%p744_p12), %s667_s4, 128, %s665_s14, %s197_s13  }
 0x192 PF: > { %s235_s24 = sand.u32 1, %s509_s9   ;;  %p745_p1 = scmp.ne.s32.totalorder %s739_s22, 0 }
 0x193   : > { %p746_p3 = scmp.ge.s32.totalorder %s521_s12, 2  ;;  %s236_s27 = scalar_lea.sflag [#allocation4], %s235_s24 }
 0x195   : > { %p351_p5 = pnand %p746_p3, %p745_p1 }
 0x197   : > { %p352_p8 = pneg %p351_p5 }
 0x199   : > { %500 = dma.done.wait (%p352_p8), %s236_s27, 128  }
 0x19a   : > { %502 = vsyncadd (%p352_p8), %s236_s27, 4294967168  ;;  %s245_s29 = scalar_lea.sflag [#allocation7], %s235_s24 }
 0x19b   : > { %504 = dma.done.wait (%p352_p8), %s245_s29, 128  }
 0x19c   : > { %506 = vsyncadd (%p352_p8), %s245_s29, 4294967168  ;;  %p19_p12 = scmp.ge.s32.totalorder %s566_s15, 4   ;;  %s747_s9 = smov %s513_s10 }
 0x19d   : > { %s748_s10 = smov %s517_s11  ;;  %s749_s11 = smov %s578_s18 }
 0x19e   : > { %s750_s12 = smov %s566_s15  ;;  %21 = sbr.rel (!%p19_p12) target bundleno = 7 (0x7), region = 86 }
 0x1a3   :  { %250 = vsyncpa [#allocation3], 1 }
 0x1a4   :  { %252 = vsyncpa [#allocation3 + $0x1], 1 }
 0x1a5   :  { %253 = vsyncpa [#allocation4], 1 }
 0x1a6   :  { %255 = vsyncpa [#allocation4 + $0x1], 1 }
 0x1a7   :  { %256 = vsyncpa [#allocation7], 1 }
 0x1a8   :  { %258 = vsyncpa [#allocation7 + $0x1], 1 }

</bundles_post_ra>
